<compile_context>
chip_gen: v7x
topology: tpu7x:2x2x1
jax: 0.10.0
libtpu: 0.0.40
codegen_flags: <defaults>
</compile_context>

<pallas_src>
import math

import jax
import jax.numpy as jnp
from jax.experimental import pallas as pl
from jax.experimental.pallas import tpu as pltpu


_GELU_C0 = math.sqrt(2.0 / math.pi)
_GELU_C1 = _GELU_C0 * 0.044715


def _gelu_new(x):
    # GPT-2 "new" gelu with sqrt(2/pi) folded into the polynomial, x*x reused.
    x2 = x * x
    return 0.5 * x * (1.0 + jnp.tanh(x * (_GELU_C0 + _GELU_C1 * x2)))


def mlp_kernel(x_ref, w_in_ref, b_in_ref, w_out_ref, b_out_ref, o_ref, acc_ref):
    """Grid = (M row tiles [parallel], d_mlp reduction tiles [arbitrary, last]).

    acc_ref is an f32 VMEM scratch accumulator; the output block is written
    exactly once (in the caller's dtype) on the last reduction step.
    """
    f = pl.program_id(1)

    @pl.when(f == 0)
    def _():
        # Seed the accumulator with the output bias (removes the epilogue add).
        acc_ref[...] = jnp.broadcast_to(b_out_ref[...], acc_ref.shape)

    # First MXU pass: (tm, tf) = x(tm, d_model)[bf16] @ W_in(d_model, tf)[bf16]
    x_bf = x_ref[...].astype(jnp.bfloat16)
    h = jnp.dot(x_bf, w_in_ref[...], preferred_element_type=jnp.float32)
    h = h + b_in_ref[...]
    a = _gelu_new(h).astype(w_out_ref.dtype)  # bf16 for the second MXU pass
    # Second MXU pass, accumulated into the resident f32 scratch.
    acc_ref[...] += jnp.dot(a, w_out_ref[...], preferred_element_type=jnp.float32)

    @pl.when(f == pl.num_programs(1) - 1)
    def _():
        o_ref[...] = acc_ref[...].astype(o_ref.dtype)


def _vmem_capacity_bytes():
    try:
        return int(pltpu.get_tpu_info().vmem_capacity_bytes)
    except Exception:
        return 64 * 1024 * 1024  # conservative (v7x) fallback


def mlp_forward(x, W_in, b_in, W_out, b_out, *, tm=512):
    """x: [batch, posn, d_model] -> [batch, posn, d_model] (same dtype as x)."""
    batch, posn, d_model = x.shape
    d_mlp = W_in.shape[1]
    M = batch * posn
    out_dtype = x.dtype
    x_itemsize = jnp.dtype(x.dtype).itemsize
    out_itemsize = jnp.dtype(out_dtype).itemsize

    # --- row tile: multiple of 16 (bf16 sublane packing); split a lone block
    #     in two when M is large so v7x's second TensorCore has work.
    def _ceil16(n):
        return max(16, ((n + 15) // 16) * 16)

    if M < tm:
        tm = _ceil16(M)
    if (M + tm - 1) // tm == 1 and M >= 256:
        tm = _ceil16((M + 1) // 2)
    M_pad = ((M + tm - 1) // tm) * tm
    n_m = M_pad // tm

    # --- per-generation VMEM limit (~3/4 of physical capacity)
    cap = _vmem_capacity_bytes()
    vmem_limit = (3 * cap) // 4

    # --- reduction tile over d_mlp: prefer full residency (tf = d_mlp)
    def vmem_est(tf):
        w_blk = 2 * d_model * tf * 2 * 2            # W_in + W_out blocks, bf16, double buffered
        x_blk = tm * d_model * x_itemsize * 2       # x block, native dtype, double buffered
        o_blk = tm * d_model * out_itemsize * 2     # output block, double buffered
        acc = tm * d_model * 4                      # f32 accumulator scratch
        hidden = tm * tf * (4 + 2)                  # h (f32) + a (bf16) temporaries
        bias = (tf + d_model) * 4 * 2
        return w_blk + x_blk + o_blk + acc + hidden + bias

    candidates = [c for c in (d_mlp, 1024, 512, 256, 128)
                  if c <= d_mlp and d_mlp % c == 0]
    if not candidates:
        candidates = [d_mlp]
    tf = candidates[-1]
    for cand in candidates:
        if vmem_est(cand) <= int(0.85 * vmem_limit):
            tf = cand
            break
    n_f = d_mlp // tf
    vmem_limit = min(cap, max(vmem_limit, int(1.25 * vmem_est(tf))))

    # --- flatten; pad ragged rows (x kept in its native dtype, cast in-kernel)
    x2d = x.reshape(M, d_model)
    if M_pad != M:
        x2d = jnp.pad(x2d, ((0, M_pad - M), (0, 0)))

    w_in_bf = W_in.astype(jnp.bfloat16)
    w_out_bf = W_out.astype(jnp.bfloat16)
    b_in2d = b_in.reshape(1, d_mlp).astype(jnp.float32)
    b_out2d = b_out.reshape(1, d_model).astype(jnp.float32)

    out2d = pl.pallas_call(
        mlp_kernel,
        out_shape=jax.ShapeDtypeStruct((M_pad, d_model), out_dtype),
        grid_spec=pltpu.PrefetchScalarGridSpec(
            num_scalar_prefetch=0,
            grid=(n_m, n_f),  # reduction axis last
            in_specs=[
                pl.BlockSpec((tm, d_model), lambda i, f: (i, 0)),   # x rows
                pl.BlockSpec((d_model, tf), lambda i, f: (0, f)),   # W_in cols
                pl.BlockSpec((1, tf), lambda i, f: (0, f)),         # b_in slice
                pl.BlockSpec((tf, d_model), lambda i, f: (f, 0)),   # W_out rows
                pl.BlockSpec((1, d_model), lambda i, f: (0, 0)),    # b_out
            ],
            out_specs=pl.BlockSpec((tm, d_model), lambda i, f: (i, 0)),
            scratch_shapes=[pltpu.VMEM((tm, d_model), jnp.float32)],
        ),
        compiler_params=pltpu.CompilerParams(
            dimension_semantics=("parallel", "arbitrary"),
            vmem_limit_bytes=int(vmem_limit),
        ),
    )(x2d, w_in_bf, b_in2d, w_out_bf, b_out2d)

    out2d = out2d[:M]
    return out2d.reshape(batch, posn, d_model)


def mlp_reference(x, W_in, b_in, W_out, b_out):
    # Full-precision reference matching the PyTorch MLP.forward semantics.
    h = jnp.einsum("bpm,mf->bpf", x, W_in) + b_in
    a = _gelu_new(h)
    return jnp.einsum("bpf,fm->bpm", a, W_out) + b_out


if __name__ == "__main__":
    # Small correctness smoke test (scaled down from d_model=768 / d_mlp=3072).
    # Tuning conclusions should be drawn at production shapes, not here.
    batch, posn, d_model, d_mlp = 2, 8, 128, 512
    init_range = 0.02

    key = jax.random.PRNGKey(0)
    kx, kw_in, kw_out = jax.random.split(key, 3)

    x = jax.random.normal(kx, (batch, posn, d_model), dtype=jnp.float32)
    W_in = init_range * jax.random.normal(kw_in, (d_model, d_mlp), dtype=jnp.float32)
    W_out = init_range * jax.random.normal(kw_out, (d_mlp, d_model), dtype=jnp.float32)
    b_in = jnp.zeros((d_mlp,), dtype=jnp.float32)
    b_out = jnp.zeros((d_model,), dtype=jnp.float32)

    out = mlp_forward(x, W_in, b_in, W_out, b_out)
    jax.block_until_ready(out)

    ref = mlp_reference(x, W_in, b_in, W_out, b_out)
    assert out.shape == (batch, posn, d_model)
    # bf16 MXU operands inside the kernel -> loosened tolerance vs f32 reference
    assert jnp.allclose(out, ref, atol=2e-2, rtol=2e-2), "mismatch vs reference"

    print("KERNEL_OK")
</pallas_src>

<mosaic_0001>
module attributes {stable_mosaic.version = 11 : i64} {
  func.func @mlp_kernel(%arg0: i32, %arg1: i32, %arg2: memref<16x128xf32, #tpu.memory_space<vmem>>, %arg3: memref<128x512xbf16, #tpu.memory_space<vmem>>, %arg4: memref<1x512xf32, #tpu.memory_space<vmem>>, %arg5: memref<512x128xbf16, #tpu.memory_space<vmem>>, %arg6: memref<1x128xf32, #tpu.memory_space<vmem>>, %arg7: memref<16x128xf32, #tpu.memory_space<vmem>>, %arg8: memref<16x128xf32, #tpu.memory_space<vmem>>) attributes {dimension_semantics = [#tpu.dimension_semantics<parallel>, #tpu.dimension_semantics<arbitrary>], iteration_bounds = array<i64: 1, 1>, scalar_prefetch = 0 : i64, scratch_operands = 1 : i64, tpu.core_type = #tpu.core_type<tc>, window_params = [{transform_indices = @transform_0, window_bounds = array<i64: 16, 128>}, {transform_indices = @transform_1, window_bounds = array<i64: 128, 512>}, {transform_indices = @transform_2, window_bounds = array<i64: 1, 512>}, {transform_indices = @transform_3, window_bounds = array<i64: 512, 128>}, {pipeline_mode = #tpu.pipeline_mode<synchronous>, transform_indices = @transform_4, window_bounds = array<i64: 1, 128>}, {transform_indices = @transform_5, window_bounds = array<i64: 16, 128>}]} {
    %c0_i32 = arith.constant 0 : i32
    %0 = arith.cmpi eq, %arg1, %c0_i32 : i32
    %1 = arith.extui %0 : i1 to i32
    %c0_i32_0 = arith.constant 0 : i32
    %2 = arith.cmpi ne, %1, %c0_i32_0 : i32
    scf.if %2 {
      %c0_19 = arith.constant 0 : index
      %c0_20 = arith.constant 0 : index
      %31 = vector.load %arg6[%c0_19, %c0_20] : memref<1x128xf32, #tpu.memory_space<vmem>>, vector<1x128xf32>
      %32 = vector.shape_cast %31 : vector<1x128xf32> to vector<1x128xf32>
      %33 = vector.broadcast %32 : vector<1x128xf32> to vector<16x128xf32>
      %c0_21 = arith.constant 0 : index
      %c0_22 = arith.constant 0 : index
      %34 = vector.load %arg8[%c0_21, %c0_22] : memref<16x128xf32, #tpu.memory_space<vmem>>, vector<16x128xf32>
      tpu.vector_store %arg8[%c0_21, %c0_22], %33 {strides = array<i32>} : memref<16x128xf32, #tpu.memory_space<vmem>>, vector<16x128xf32>,
    } else {
    }
    %c0 = arith.constant 0 : index
    %c0_1 = arith.constant 0 : index
    %3 = vector.load %arg2[%c0, %c0_1] : memref<16x128xf32, #tpu.memory_space<vmem>>, vector<16x128xf32>
    %4 = arith.truncf %3 : vector<16x128xf32> to vector<16x128xbf16>
    %c0_2 = arith.constant 0 : index
    %c0_3 = arith.constant 0 : index
    %5 = vector.load %arg3[%c0_2, %c0_3] : memref<128x512xbf16, #tpu.memory_space<vmem>>, vector<128x512xbf16>
    %cst = arith.constant dense<0.000000e+00> : vector<16x512xf32>
    %6 = tpu.matmul %4, %5, %cst {dimension_numbers = #tpu.dot_dimension_numbers<[1], [0], [0], [1], [0, 0, 1, 1], [], []>} : vector<16x128xbf16>, vector<128x512xbf16>, vector<16x512xf32> -> vector<16x512xf32>
    %c0_4 = arith.constant 0 : index
    %c0_5 = arith.constant 0 : index
    %7 = vector.load %arg4[%c0_4, %c0_5] : memref<1x512xf32, #tpu.memory_space<vmem>>, vector<1x512xf32>
    %8 = vector.broadcast %7 : vector<1x512xf32> to vector<16x512xf32>
    %9 = arith.addf %6, %8 : vector<16x512xf32>
    %10 = arith.mulf %9, %9 : vector<16x512xf32>
    %cst_6 = arith.constant 5.000000e-01 : f32
    %11 = vector.broadcast %cst_6 : f32 to vector<16x512xf32>
    %12 = arith.mulf %11, %9 : vector<16x512xf32>
    %cst_7 = arith.constant 0.0356774069 : f32
    %13 = vector.broadcast %cst_7 : f32 to vector<16x512xf32>
    %14 = arith.mulf %13, %10 : vector<16x512xf32>
    %cst_8 = arith.constant 0.797884583 : f32
    %15 = vector.broadcast %cst_8 : f32 to vector<16x512xf32>
    %16 = arith.addf %15, %14 : vector<16x512xf32>
    %17 = arith.mulf %9, %16 : vector<16x512xf32>
    %18 = math.tanh %17 : vector<16x512xf32>
    %cst_9 = arith.constant 1.000000e+00 : f32
    %19 = vector.broadcast %cst_9 : f32 to vector<16x512xf32>
    %20 = arith.addf %19, %18 : vector<16x512xf32>
    %21 = arith.mulf %12, %20 : vector<16x512xf32>
    %22 = arith.truncf %21 : vector<16x512xf32> to vector<16x512xbf16>
    %c0_10 = arith.constant 0 : index
    %c0_11 = arith.constant 0 : index
    %23 = vector.load %arg8[%c0_10, %c0_11] : memref<16x128xf32, #tpu.memory_space<vmem>>, vector<16x128xf32>
    %c0_12 = arith.constant 0 : index
    %c0_13 = arith.constant 0 : index
    %24 = vector.load %arg5[%c0_12, %c0_13] : memref<512x128xbf16, #tpu.memory_space<vmem>>, vector<512x128xbf16>
    %cst_14 = arith.constant dense<0.000000e+00> : vector<16x128xf32>
    %25 = tpu.matmul %22, %24, %cst_14 {dimension_numbers = #tpu.dot_dimension_numbers<[1], [0], [0], [1], [0, 0, 1, 1], [], []>} : vector<16x512xbf16>, vector<512x128xbf16>, vector<16x128xf32> -> vector<16x128xf32>
    %26 = arith.addf %23, %25 : vector<16x128xf32>
    %c0_15 = arith.constant 0 : index
    %c0_16 = arith.constant 0 : index
    %27 = vector.load %arg8[%c0_15, %c0_16] : memref<16x128xf32, #tpu.memory_space<vmem>>, vector<16x128xf32>
    tpu.vector_store %arg8[%c0_15, %c0_16], %26 {strides = array<i32>} : memref<16x128xf32, #tpu.memory_space<vmem>>, vector<16x128xf32>,
    %c0_i32_17 = arith.constant 0 : i32
    %28 = arith.cmpi eq, %arg1, %c0_i32_17 : i32
    %29 = arith.extui %28 : i1 to i32
    %c0_i32_18 = arith.constant 0 : i32
    %30 = arith.cmpi ne, %29, %c0_i32_18 : i32
    scf.if %30 {
      %c0_19 = arith.constant 0 : index
      %c0_20 = arith.constant 0 : index
      %31 = vector.load %arg8[%c0_19, %c0_20] : memref<16x128xf32, #tpu.memory_space<vmem>>, vector<16x128xf32>
      %c0_21 = arith.constant 0 : index
      %c0_22 = arith.constant 0 : index
      %32 = vector.load %arg7[%c0_21, %c0_22] : memref<16x128xf32, #tpu.memory_space<vmem>>, vector<16x128xf32>
      tpu.vector_store %arg7[%c0_21, %c0_22], %31 {strides = array<i32>} : memref<16x128xf32, #tpu.memory_space<vmem>>, vector<16x128xf32>,
    } else {
    }
    return
  }
  func.func @transform_0(%arg0: i32, %arg1: i32) -> (i32, i32) {
    %c0_i32 = arith.constant 0 : i32
    %c0_i32_0 = arith.constant 0 : i32
    return %arg0, %c0_i32 : i32, i32
  }
  func.func @transform_1(%arg0: i32, %arg1: i32) -> (i32, i32) {
    %c0_i32 = arith.constant 0 : i32
    %c0_i32_0 = arith.constant 0 : i32
    return %c0_i32, %arg1 : i32, i32
  }
  func.func @transform_2(%arg0: i32, %arg1: i32) -> (i32, i32) {
    %c0_i32 = arith.constant 0 : i32
    %c0_i32_0 = arith.constant 0 : i32
    return %c0_i32, %arg1 : i32, i32
  }
  func.func @transform_3(%arg0: i32, %arg1: i32) -> (i32, i32) {
    %c0_i32 = arith.constant 0 : i32
    %c0_i32_0 = arith.constant 0 : i32
    return %arg1, %c0_i32 : i32, i32
  }
  func.func @transform_4(%arg0: i32, %arg1: i32) -> (i32, i32) {
    %c0_i32 = arith.constant 0 : i32
    %c0_i32_0 = arith.constant 0 : i32
    %c0_i32_1 = arith.constant 0 : i32
    return %c0_i32, %c0_i32_0 : i32, i32
  }
  func.func @transform_5(%arg0: i32, %arg1: i32) -> (i32, i32) {
    %c0_i32 = arith.constant 0 : i32
    %c0_i32_0 = arith.constant 0 : i32
    return %arg0, %c0_i32 : i32, i32
  }
}

</mosaic_0001>

<bundles_post_ra>
// kernel: tpu_custom_call.1
= control target key start
LH: loop header
LB: loop body
LE: loop exit
PB: predicated region body
PF: predicated region fallthrough
CT: control target
= control target key end

     0   :  { %10 = vsyncpa [#allocation4], 0  ;;  %s1239_s0 = inlined_call_operand.hbm [shape: f32[16,128], index: 0, kind: input, shape index: {}]   ;;  %s1240_s1 = inlined_call_operand.hbm [shape: bf16[128,512], index: 1, kind: input, shape index: {}]   ;;  %s1241_s2 = inlined_call_operand.vmem [shape: f32[1,512], index: 2, kind: input, shape index: {}]   ;;  %s1242_s3 = inlined_call_operand.hbm [shape: bf16[512,128], index: 3, kind: input, shape index: {}]   ;;  %s1243_s4 = inlined_call_operand.vmem [shape: f32[1,128], index: 4, kind: input, shape index: {}]   ;;  %s1244_s5 = inlined_call_operand.hbm [shape: f32[16,128], index: 5, kind: output, shape index: {}]  }
   0x1   :  { %11 = vsyncpa [#allocation7], 0 }
   0x2   :  { %12 = vsyncpa [#allocation5], 0  ;;  %s1126_s18 = smov [#allocation6]   ;;  %s1032_s22 = scalar_lea.hbm %s1240_s1, 4096 }
   0x3   :  { %s30_s19 = sshll.u32 %s1126_s18, 4  ;;  %p1033_p0 = scmp.ne.s32.totalorder %s1240_s1, %s1032_s22  ;;  %s31_s19 = int_to_ptr.vmem [resolvable:$true] %s30_s19 }
   0x4   :  { %p1036_p1 = scmp.lt.u32.totalorder %s1032_s22, %s1240_s1 }
   0x6   :  { %p1038_p2 = pnand %p1036_p1, %p1033_p0 }
   0x8   :  { %1041 = shalt.err (!%p1038_p2)
}
   0x9   :  { %s1042_s27 = scalar_lea.vmem %s31_s19, 4096  ;;  %p1047_p4 = scmp.lt.s32.totalorder %s31_s19, %s31_s19 }
   0xa   :  { %p1043_p3 = scmp.ne.s32.totalorder %s31_s19, %s1042_s27  ;;  %p1048_p5 = scmp.lt.s32.totalorder %s1042_s27, %s1042_s27 }
   0xc   :  { %p1049_p6 = por %p1048_p5, %p1047_p4 }
   0xe   :  { %p1050_p7 = pnand %p1049_p6, %p1043_p3 }
  0x10   :  { %1053 = shalt.err (!%p1050_p7)
}
  0x11   :  { %s1127_s28 = smov 256   ;;  %s1128_s29 = smov 16  }
  0x12   :  { %36 = dma.hbm_to_vmem [thread:$0]  %s1240_s1, 4096, %s31_s19, [#allocation7], %s1127_s28, %s1127_s28, %s1128_s29  }
  0x13   :  { %s1129_s7 = smov [#allocation3]   ;;  %s1054_s11 = scalar_lea.hbm %s1239_s0, 256 }
  0x14   :  { %s18_s8 = sshll.u32 %s1129_s7, 4  ;;  %p1055_p8 = scmp.ne.s32.totalorder %s1239_s0, %s1054_s11  ;;  %s19_s8 = int_to_ptr.vmem [resolvable:$true] %s18_s8 }
  0x15   :  { %p1058_p9 = scmp.lt.u32.totalorder %s1054_s11, %s1239_s0 }
  0x17   :  { %p1060_p10 = pnand %p1058_p9, %p1055_p8 }
  0x19   :  { %1063 = shalt.err (!%p1060_p10)
}
  0x1a   :  { %s1064_s16 = scalar_lea.vmem %s19_s8, 256  ;;  %p1069_p12 = scmp.lt.s32.totalorder %s19_s8, %s19_s8 }
  0x1b   :  { %p1065_p11 = scmp.ne.s32.totalorder %s19_s8, %s1064_s16  ;;  %p1070_p13 = scmp.lt.s32.totalorder %s1064_s16, %s1064_s16 }
  0x1d   :  { %p1071_p0 = por %p1070_p13, %p1069_p12 }
  0x1f   :  { %p1072_p1 = pnand %p1071_p0, %p1065_p11 }
  0x21   :  { %1075 = shalt.err (!%p1072_p1)
}
  0x22   :  { %s1130_s1 = smov 128   ;;  %s1131_s17 = smov 8  }
  0x23   :  { %24 = dma.hbm_to_vmem [thread:$0]  %s1239_s0, 256, %s19_s8, [#allocation4], %s1130_s1, %s1130_s1, %s1131_s17  }
  0x24   :  { %s1132_s20 = smov [#allocation8]   ;;  %s1076_s24 = scalar_lea.hbm %s1242_s3, 4096 }
  0x25   :  { %s44_s21 = sshll.u32 %s1132_s20, 4  ;;  %p1077_p2 = scmp.ne.s32.totalorder %s1242_s3, %s1076_s24  ;;  %s45_s21 = int_to_ptr.vmem [resolvable:$true] %s44_s21 }
  0x26   :  { %p1080_p3 = scmp.lt.u32.totalorder %s1076_s24, %s1242_s3 }
  0x28   :  { %p1082_p4 = pnand %p1080_p3, %p1077_p2 }
  0x2a   :  { %1085 = shalt.err (!%p1082_p4)
}
  0x2b   :  { %s1086_s29 = scalar_lea.vmem %s45_s21, 4096  ;;  %p1091_p6 = scmp.lt.s32.totalorder %s45_s21, %s45_s21 }
  0x2c   :  { %p1087_p5 = scmp.ne.s32.totalorder %s45_s21, %s1086_s29  ;;  %p1092_p7 = scmp.lt.s32.totalorder %s1086_s29, %s1086_s29 }
  0x2e   :  { %p1093_p8 = por %p1092_p7, %p1091_p6 }
  0x30   :  { %p1094_p9 = pnand %p1093_p8, %p1087_p5 }
  0x32   :  { %1097 = shalt.err (!%p1094_p9)
}
  0x33   :  { %s1133_s0 = smov 64   ;;  %s1134_s30 = smov 4  }
  0x34   :  { %50 = dma.hbm_to_vmem [thread:$0]  %s1242_s3, 4096, %s45_s21, [#allocation7], %s1133_s0, %s1133_s0, %s1134_s30  }
  0x35   :  { %1120 = dma.done.wait [#allocation4], 256  }
  0x36   :  { %1121 = vsyncadd [#allocation4], 4294967040 }
  0x37   :  { %1122 = dma.done.wait [#allocation7], 8192  }
  0x38   :  { %1123 = vsyncadd [#allocation7], 4294959104  ;;  %v1135_v0 = vmov 0   ;;  %v936_v1 = vld [vmem:[#allocation6 + $0x4] ss:$16 sps:$4 sm:$0xff]   ;;  %v77_v34 = vld [vmem:[#allocation3 + $0x8] sm:$0xff] }
  0x39   :  { %325 = vmatprep.mubr.bf16.mxu0 %v1135_v0  ;;  %368 = vmatprep.mubr.bf16.mxu1 %v1135_v0  ;;  %v938_v2 = vld [vmem:[#allocation6 + $0xc] ss:$16 sps:$4 sm:$0xff]   ;;  %v940_v3 = vld [vmem:[#allocation6] ss:$16 sps:$4 sm:$0xff]   ;;  %v941_v4 = vld [vmem:[#allocation6 + $0x8] ss:$16 sps:$4 sm:$0xff]  }
  0x3a   :  { %293 = vmatprep.subr.bf16.mxu0 %v936_v1  ;;  %336 = vmatprep.subr.bf16.mxu1 %v938_v2  ;;  %v942_v5 = vld [vmem:[#allocation6 + $0x24] ss:$16 sps:$4 sm:$0xff]   ;;  %v944_v6 = vld [vmem:[#allocation6 + $0x2c] ss:$16 sps:$4 sm:$0xff]   ;;  %v946_v7 = vld [vmem:[#allocation6 + $0x20] ss:$16 sps:$4 sm:$0xff]  }
  0x3b   :  { %294 = vmatpush1.bf16.msra.mxu0 %v940_v3  ;;  %337 = vmatpush1.bf16.msra.mxu1 %v941_v4  ;;  %v947_v8 = vld [vmem:[#allocation6 + $0x28] ss:$16 sps:$4 sm:$0xff]   ;;  %v948_v9 = vld [vmem:[#allocation6 + $0x44] ss:$16 sps:$4 sm:$0xff]   ;;  %v950_v10 = vld [vmem:[#allocation6 + $0x4c] ss:$16 sps:$4 sm:$0xff]   ;;  %v113_v4 = vlaneseq }
  0x3c   :  { %295 = vmatprep.subr.bf16.mxu0 %v942_v5  ;;  %338 = vmatprep.subr.bf16.mxu1 %v944_v6  ;;  %v952_v11 = vld [vmem:[#allocation6 + $0x40] ss:$16 sps:$4 sm:$0xff]   ;;  %v953_v12 = vld [vmem:[#allocation6 + $0x48] ss:$16 sps:$4 sm:$0xff]   ;;  %v954_v13 = vld [vmem:[#allocation6 + $0x64] ss:$16 sps:$4 sm:$0xff]  }
  0x3d   :  { %v956_v14 = vld [vmem:[#allocation6 + $0x6c] ss:$16 sps:$4 sm:$0xff]   ;;  %v958_v15 = vld [vmem:[#allocation6 + $0x60] ss:$16 sps:$4 sm:$0xff]   ;;  %v959_v16 = vld [vmem:[#allocation6 + $0x68] ss:$16 sps:$4 sm:$0xff]  }
  0x3e   :  { %v960_v17 = vld [vmem:[#allocation6 + $0x84] ss:$16 sps:$4 sm:$0xff]   ;;  %v962_v18 = vld [vmem:[#allocation6 + $0x8c] ss:$16 sps:$4 sm:$0xff]   ;;  %v964_v19 = vld [vmem:[#allocation6 + $0x80] ss:$16 sps:$4 sm:$0xff]  }
  0x3f   :  { %296 = vmatpush1.bf16.msra.mxu0 %v946_v7  ;;  %339 = vmatpush1.bf16.msra.mxu1 %v947_v8  ;;  %v965_v20 = vld [vmem:[#allocation6 + $0x88] ss:$16 sps:$4 sm:$0xff]   ;;  %v966_v21 = vld [vmem:[#allocation6 + $0xa4] ss:$16 sps:$4 sm:$0xff]   ;;  %v968_v22 = vld [vmem:[#allocation6 + $0xac] ss:$16 sps:$4 sm:$0xff]  }
  0x40   :  { %297 = vmatprep.subr.bf16.mxu0 %v948_v9  ;;  %340 = vmatprep.subr.bf16.mxu1 %v950_v10  ;;  %v970_v23 = vld [vmem:[#allocation6 + $0xa0] ss:$16 sps:$4 sm:$0xff]   ;;  %v971_v24 = vld [vmem:[#allocation6 + $0xa8] ss:$16 sps:$4 sm:$0xff]   ;;  %v972_v25 = vld [vmem:[#allocation6 + $0xc4] ss:$16 sps:$4 sm:$0xff]  }
  0x41   :  { %v974_v26 = vld [vmem:[#allocation6 + $0xcc] ss:$16 sps:$4 sm:$0xff]   ;;  %v976_v27 = vld [vmem:[#allocation6 + $0xc0] ss:$16 sps:$4 sm:$0xff]   ;;  %v977_v28 = vld [vmem:[#allocation6 + $0xc8] ss:$16 sps:$4 sm:$0xff]  }
  0x42   :  { %v978_v29 = vld [vmem:[#allocation6 + $0xe4] ss:$16 sps:$4 sm:$0xff]   ;;  %v980_v30 = vld [vmem:[#allocation6 + $0xec] ss:$16 sps:$4 sm:$0xff]   ;;  %v982_v31 = vld [vmem:[#allocation6 + $0xe0] ss:$16 sps:$4 sm:$0xff]  }
  0x43   :  { %298 = vmatpush1.bf16.msra.mxu0 %v952_v11  ;;  %341 = vmatpush1.bf16.msra.mxu1 %v953_v12  ;;  %v983_v32 = vld [vmem:[#allocation6 + $0xe8] ss:$16 sps:$4 sm:$0xff]   ;;  %v76_v33 = vld [vmem:[#allocation3] sm:$0xff]  ;;  %v984_v36 = vld [vmem:[#allocation8 + $0x40] sm:$0xff]   ;;  %v114_v5 = vshrl.u32 %v113_v4, 7  ;;  %s1136_s10 = smov [#allocation9]  }
  0x44   :  { %299 = vmatprep.subr.bf16.mxu0 %v954_v13  ;;  %342 = vmatprep.subr.bf16.mxu1 %v956_v14  ;;  %v78_v35 = vpack.c.bf16 %v77_v34, %v76_v33  ;;  %v985_v37 = vld [vmem:[#allocation8 + $0xc0] sm:$0xff]   ;;  %v988_v40 = vld [vmem:[#allocation8 + $0x48] sm:$0xff]   ;;  %v992_v44 = vld [vmem:[#allocation8 + $0x50] sm:$0xff]   ;;  %s803_s11 = sshll.u32 %s1136_s10, 4  ;;  %s804_s11 = int_to_ptr.vmem [resolvable:$true] %s803_s11 }
  0x45   :  { %v986_v38 = vld [vmem:[#allocation8] sm:$0xff]   ;;  %v989_v41 = vld [vmem:[#allocation8 + $0xc8] sm:$0xff]   ;;  %v993_v45 = vld [vmem:[#allocation8 + $0xd0] sm:$0xff]   ;;  %v115_v6 = vsub.s32 0, %v114_v5  ;;  %v123_v7 = vsub.s32 2, %v114_v5  ;;  %v119_v9 = vsub.s32 1, %v114_v5  ;;  %p1103_p11 = scmp.lt.s32.totalorder %s804_s11, %s804_s11 }
  0x46   :  { %v987_v39 = vld [vmem:[#allocation8 + $0x80] sm:$0xff]   ;;  %v990_v42 = vld [vmem:[#allocation8 + $0x8] sm:$0xff]   ;;  %v994_v46 = vld [vmem:[#allocation8 + $0x10] sm:$0xff]   ;;  %v127_v10 = vsub.s32 3, %v114_v5  ;;  %s1098_s12 = scalar_lea.vmem %s804_s11, 256 }
  0x47   :  { %300 = vmatpush1.bf16.msra.mxu0 %v958_v15  ;;  %343 = vmatpush1.bf16.msra.mxu1 %v959_v16  ;;  %v991_v43 = vld [vmem:[#allocation8 + $0x88] sm:$0xff]   ;;  %v995_v47 = vld [vmem:[#allocation8 + $0x90] sm:$0xff]   ;;  %v996_v48 = vld [vmem:[#allocation8 + $0x58] sm:$0xff]   ;;  %p1099_p10 = scmp.ne.s32.totalorder %s804_s11, %s1098_s12  ;;  %p1104_p12 = scmp.lt.s32.totalorder %s1098_s12, %s1098_s12 }
  0x48   :  { %301 = vmatprep.subr.bf16.mxu0 %v960_v17  ;;  %344 = vmatprep.subr.bf16.mxu1 %v962_v18  ;;  %v997_v49 = vld [vmem:[#allocation8 + $0xd8] sm:$0xff]   ;;  %v1000_v52 = vld [vmem:[#allocation8 + $0x60] sm:$0xff]   ;;  %v1004_v56 = vld [vmem:[#allocation8 + $0x68] sm:$0xff]  }
  0x49   :  { %v998_v50 = vld [vmem:[#allocation8 + $0x18] sm:$0xff]   ;;  %v1001_v53 = vld [vmem:[#allocation8 + $0xe0] sm:$0xff]   ;;  %v1005_v57 = vld [vmem:[#allocation8 + $0xe8] sm:$0xff]   ;;  %p1105_p13 = por %p1104_p12, %p1103_p11 }
  0x4a   :  { %v999_v51 = vld [vmem:[#allocation8 + $0x98] sm:$0xff]   ;;  %v1002_v54 = vld [vmem:[#allocation8 + $0x20] sm:$0xff]   ;;  %v1006_v58 = vld [vmem:[#allocation8 + $0x28] sm:$0xff]  }
  0x4b   :  { %302 = vmatpush1.bf16.msra.mxu0 %v964_v19  ;;  %345 = vmatpush1.bf16.msra.mxu1 %v965_v20  ;;  %v1003_v55 = vld [vmem:[#allocation8 + $0xa0] sm:$0xff]   ;;  %v1007_v59 = vld [vmem:[#allocation8 + $0xa8] sm:$0xff]   ;;  %v1008_v60 = vld [vmem:[#allocation8 + $0x70] sm:$0xff]   ;;  %p1106_p0 = pnand %p1105_p13, %p1099_p10 }
  0x4c   :  { %303 = vmatprep.subr.bf16.mxu0 %v966_v21  ;;  %346 = vmatprep.subr.bf16.mxu1 %v968_v22  ;;  %v1009_v61 = vld [vmem:[#allocation8 + $0xf0] sm:$0xff]   ;;  %v1012_v0 = vld [vmem:[#allocation8 + $0x78] sm:$0xff]  }
  0x4d   :  { %v1010_v62 = vld [vmem:[#allocation8 + $0x30] sm:$0xff]   ;;  %v1013_v1 = vld [vmem:[#allocation8 + $0xf8] sm:$0xff]  }
  0x4e   :  { %v1011_v63 = vld [vmem:[#allocation8 + $0xb0] sm:$0xff]   ;;  %v1014_v2 = vld [vmem:[#allocation8 + $0x38] sm:$0xff]  }
  0x4f   :  { %304 = vmatpush1.bf16.msra.mxu0 %v970_v23  ;;  %347 = vmatpush1.bf16.msra.mxu1 %v971_v24  ;;  %v1015_v3 = vld [vmem:[#allocation8 + $0xb8] sm:$0xff]   ;;  %v111_v8 = vld [vmem:[%s1241_s2] sm:$0xf] }
  0x50   :  { %305 = vmatprep.subr.bf16.mxu0 %v972_v25  ;;  %348 = vmatprep.subr.bf16.mxu1 %v974_v26  ;;  %v116_v11 = vrot.slane %v111_v8, %v115_v6  ;;  %v124_v12 = vrot.slane %v111_v8, %v123_v7  ;;  %v120_v13 = vrot.slane %v111_v8, %v119_v9 }
  0x51   :  { %v128_v14 = vrot.slane %v111_v8, %v127_v10 }
  0x53   :  { %306 = vmatpush1.bf16.msra.mxu0 %v976_v27  ;;  %349 = vmatpush1.bf16.msra.mxu1 %v977_v28 }
  0x54   :  { %307 = vmatprep.subr.bf16.mxu0 %v978_v29  ;;  %350 = vmatprep.subr.bf16.mxu1 %v980_v30 }
  0x57   :  { %308 = vmatpush1.bf16.msra.mxu0 %v982_v31  ;;  %351 = vmatpush1.bf16.msra.mxu1 %v983_v32 }
  0x58   :  { %881 = vmatprep.subr.bf16.mxu0 %v984_v36  ;;  %903 = vmatprep.subr.bf16.mxu1 %v985_v37 }
  0x5a   :  { %326 = vmatmul.mubr.bf16.vlgmr.msra.gmra.mrb[0].mxu0 %v78_v35  ;;  %369 = vmatmul.mubr.bf16.vlgmr.msra.gmra.mrb[0].mxu1 %v78_v35 }
  0x5b   :  { %882 = vmatpush3.bf16.msra.mxu0 %v986_v38  ;;  %904 = vmatpush3.bf16.msra.mxu1 %v987_v39 }
  0x5c   :  { %883 = vmatprep.subr.bf16.mxu0 %v988_v40  ;;  %905 = vmatprep.subr.bf16.mxu1 %v989_v41 }
  0x5f   :  { %884 = vmatpush3.bf16.msra.mxu0 %v990_v42  ;;  %906 = vmatpush3.bf16.msra.mxu1 %v991_v43 }
  0x60   :  { %885 = vmatprep.subr.bf16.mxu0 %v992_v44  ;;  %907 = vmatprep.subr.bf16.mxu1 %v993_v45 }
  0x63   :  { %886 = vmatpush3.bf16.msra.mxu0 %v994_v46  ;;  %908 = vmatpush3.bf16.msra.mxu1 %v995_v47 }
  0x64   :  { %887 = vmatprep.subr.bf16.mxu0 %v996_v48  ;;  %909 = vmatprep.subr.bf16.mxu1 %v997_v49 }
  0x67   :  { %888 = vmatpush3.bf16.msra.mxu0 %v998_v50  ;;  %910 = vmatpush3.bf16.msra.mxu1 %v999_v51 }
  0x68   :  { %889 = vmatprep.subr.bf16.mxu0 %v1000_v52  ;;  %911 = vmatprep.subr.bf16.mxu1 %v1001_v53 }
  0x6b   :  { %890 = vmatpush3.bf16.msra.mxu0 %v1002_v54  ;;  %912 = vmatpush3.bf16.msra.mxu1 %v1003_v55 }
  0x6c   :  { %891 = vmatprep.subr.bf16.mxu0 %v1004_v56  ;;  %913 = vmatprep.subr.bf16.mxu1 %v1005_v57 }
  0x6f   :  { %892 = vmatpush3.bf16.msra.mxu0 %v1006_v58  ;;  %914 = vmatpush3.bf16.msra.mxu1 %v1007_v59 }
  0x70   :  { %893 = vmatprep.subr.bf16.mxu0 %v1008_v60  ;;  %915 = vmatprep.subr.bf16.mxu1 %v1009_v61 }
  0x73   :  { %894 = vmatpush3.bf16.msra.mxu0 %v1010_v62  ;;  %916 = vmatpush3.bf16.msra.mxu1 %v1011_v63 }
  0x74   :  { %895 = vmatprep.subr.bf16.mxu0 %v1012_v0  ;;  %917 = vmatprep.subr.bf16.mxu1 %v1013_v1 }
  0x77   :  { %896 = vmatpush3.bf16.msra.mxu0 %v1014_v2  ;;  %918 = vmatpush3.bf16.msra.mxu1 %v1015_v3 }
 0x12d   :  { %v327_v15 = vpop.f32.mrb[0].mxu0  ;;  %v370_v16 = vpop.f32.mrb[0].mxu1 }
 0x12e   :  { %v328_v17 = vadd.f32 %v327_v15, %v116_v11  ;;  %v371_v18 = vadd.f32 %v370_v16, %v124_v12  ;;  %v329_v19 = vpop.f32.mrb[1].mxu0  ;;  %v372_v20 = vpop.f32.mrb[1].mxu1 }
 0x12f   :  { %v1209_v21 = vadd.f32 %v329_v19, %v120_v13  ;;  %v1211_v22 = vadd.f32 %v372_v20, %v128_v14  ;;  %v331_v23 = vpop.f32.mrb[2].mxu0  ;;  %v374_v24 = vpop.f32.mrb[2].mxu1 }
 0x130   :  { %v379_v25 = vmul.f32 %v328_v17, %v328_v17  ;;  %v381_v26 = vmul.f32 %v371_v18, %v371_v18  ;;  %v333_v27 = vpop.f32.mrb[3].mxu0  ;;  %v376_v28 = vpop.f32.mrb[3].mxu1  ;;  %v332_v33 = vadd.f32 %v331_v23, %v116_v11  ;;  %v375_v34 = vadd.f32 %v374_v24, %v124_v12 }
 0x131   :  { %v380_v29 = vmul.f32 %v1209_v21, %v1209_v21  ;;  %v382_v30 = vmul.f32 %v1211_v22, %v1211_v22  ;;  %v334_v37 = vadd.f32 %v333_v27, %v120_v13  ;;  %v377_v41 = vadd.f32 %v376_v28, %v128_v14 }
 0x132   :  { %v395_v31 = vmul.f32 0.035677407, %v379_v25  ;;  %v397_v32 = vmul.f32 0.035677407, %v381_v26  ;;  %v383_v40 = vmul.f32 %v332_v33, %v332_v33  ;;  %v385_v44 = vmul.f32 %v375_v34, %v375_v34 }
 0x133   :  { %v396_v35 = vmul.f32 0.035677407, %v380_v29  ;;  %v398_v36 = vmul.f32 0.035677407, %v382_v30  ;;  %v384_v48 = vmul.f32 %v334_v37, %v334_v37  ;;  %v386_v54 = vmul.f32 %v377_v41, %v377_v41 }
 0x134   :  { %v403_v38 = vadd.f32 0.7978846, %v395_v31  ;;  %v405_v39 = vadd.f32 0.7978846, %v397_v32  ;;  %v399_v47 = vmul.f32 0.035677407, %v383_v40 }
 0x135   :  { %v404_v42 = vadd.f32 0.7978846, %v396_v35  ;;  %v406_v43 = vadd.f32 0.7978846, %v398_v36  ;;  %v401_v51 = vmul.f32 0.035677407, %v385_v44 }
 0x136   :  { %v411_v45 = vmul.f32 %v403_v38, %v328_v17  ;;  %v413_v46 = vmul.f32 %v405_v39, %v371_v18  ;;  %v407_v52 = vadd.f32 0.7978846, %v399_v47  ;;  %v400_v53 = vmul.f32 0.035677407, %v384_v48 }
 0x137   :  { %v412_v49 = vmul.f32 %v404_v42, %v1209_v21  ;;  %v414_v50 = vmul.f32 %v406_v43, %v1211_v22  ;;  %v409_v55 = vadd.f32 0.7978846, %v401_v51  ;;  %v402_v58 = vmul.f32 0.035677407, %v386_v54 }
 0x138   :  { %1016 = vtanh.f32 %v411_v45  ;;  %v415_v56 = vmul.f32 %v407_v52, %v332_v33  ;;  %v408_v57 = vadd.f32 0.7978846, %v400_v53  ;;  %v387_v5 = vmul.f32 0.5, %v328_v17  ;;  %v816_v45 = vld [vmem:[%s1243_s4] ss:$0 sm:$0xff] }
 0x139   :  { %1018 = vtanh.f32 %v413_v46  ;;  %v417_v59 = vmul.f32 %v409_v55, %v375_v34  ;;  %v410_v61 = vadd.f32 0.7978846, %v402_v58  ;;  %v389_v8 = vmul.f32 0.5, %v371_v18 }
 0x13a   :  { %1020 = vtanh.f32 %v412_v49  ;;  %v416_v60 = vmul.f32 %v408_v57, %v334_v37  ;;  %v391_v9 = vmul.f32 0.5, %v332_v33  ;;  %v388_v13 = vmul.f32 0.5, %v1209_v21 }
 0x13b   :  { %1022 = vtanh.f32 %v414_v50  ;;  %v418_v62 = vmul.f32 %v410_v61, %v377_v41  ;;  %v393_v14 = vmul.f32 0.5, %v375_v34  ;;  %v392_v16 = vmul.f32 0.5, %v334_v37 }
 0x13c   :  { %1024 = vtanh.f32 %v415_v56  ;;  %v390_v17 = vmul.f32 0.5, %v1211_v22  ;;  %v394_v28 = vmul.f32 0.5, %v377_v41 }
 0x13d   :  { %1026 = vtanh.f32 %v417_v59 }
 0x13e   :  { %1028 = vtanh.f32 %v416_v60 }
 0x13f   :  { %1030 = vtanh.f32 %v418_v62 }
 0x142   :  { %v1017_v63 = vpop.eup %1016 }
 0x143   :  { %v1019_v0 = vpop.eup %1018  ;;  %v427_v3 = vadd.f32 1.0, %v1017_v63 }
 0x144   :  { %v1021_v1 = vpop.eup %1020  ;;  %v429_v6 = vadd.f32 1.0, %v1019_v0 }
 0x145   :  { %v1023_v2 = vpop.eup %1022  ;;  %v428_v11 = vadd.f32 1.0, %v1021_v1  ;;  %v435_v19 = vmul.f32 %v427_v3, %v387_v5 }
 0x146   :  { %v1025_v4 = vpop.eup %1024  ;;  %v430_v24 = vadd.f32 1.0, %v1023_v2  ;;  %v437_v26 = vmul.f32 %v429_v6, %v389_v8 }
 0x147   :  { %v1027_v7 = vpop.eup %1026  ;;  %v431_v10 = vadd.f32 1.0, %v1025_v4  ;;  %v436_v18 = vmul.f32 %v428_v11, %v388_v13 }
 0x148   :  { %v1029_v12 = vpop.eup %1028  ;;  %v433_v15 = vadd.f32 1.0, %v1027_v7  ;;  %v438_v21 = vmul.f32 %v430_v24, %v390_v17 }
 0x149   :  { %v439_v20 = vmul.f32 %v431_v10, %v391_v9  ;;  %v432_v23 = vadd.f32 1.0, %v1029_v12  ;;  %v1031_v25 = vpop.eup %1030 }
 0x14a   :  { %v441_v27 = vmul.f32 %v433_v15, %v393_v14  ;;  %v434_v30 = vadd.f32 1.0, %v1031_v25 }
 0x14b   :  { %v440_v29 = vmul.f32 %v432_v23, %v392_v16  ;;  %v443_v31 = vpack.c.bf16 %v439_v20, %v435_v19 }
 0x14c   :  { %v445_v32 = vpack.c.bf16 %v441_v27, %v437_v26  ;;  %v442_v34 = vmul.f32 %v434_v30, %v394_v28 }
 0x14d   :  { %v444_v33 = vpack.c.bf16 %v440_v29, %v436_v18 }
 0x14e   :  { %v446_v35 = vpack.c.bf16 %v442_v34, %v438_v21 }
 0x14f   :  { %737 = vmatprep.mubr.bf16.mxu0 %v444_v33 }
 0x150   :  { %738 = vmatmul.mubr.bf16.vlgmr.msra.gmra.mrb[4].mxu0 %v443_v31  ;;  %778 = vmatprep.mubr.bf16.mxu1 %v446_v35 }
 0x151   :  { %779 = vmatmul.mubr.bf16.vlgmr.msra.gmra.mrb[4].mxu1 %v445_v32 }
 0x223   :  { %v897_v36 = vpop.f32.mrb[4].mxu0 }
 0x224   :  { %v898_v37 = vpop.f32.mrb[5].mxu0  ;;  %v919_v38 = vpop.f32.mrb[4].mxu1 }
 0x225   :  { %v899_v39 = vadd.f32 %v898_v37, %v897_v36  ;;  %v900_v22 = vpop.f32.mrb[6].mxu0  ;;  %v920_v40 = vpop.f32.mrb[5].mxu1 }
 0x226   :  { %v901_v41 = vpop.f32.mrb[7].mxu0  ;;  %v921_v42 = vadd.f32 %v920_v40, %v919_v38  ;;  %v922_v43 = vpop.f32.mrb[6].mxu1 }
 0x227   :  { %v902_v44 = vadd.f32 %v901_v41, %v900_v22  ;;  %v923_v46 = vpop.f32.mrb[7].mxu1 }
 0x228   :  { %v781_v47 = vadd.f32 %v921_v42, %v899_v39  ;;  %v924_v48 = vadd.f32 %v923_v46, %v922_v43 }
 0x22a   :  { %v787_v49 = vadd.f32 %v816_v45, %v781_v47  ;;  %v784_v50 = vadd.f32 %v924_v48, %v902_v44 }
 0x22c   :  { %796 = vst [vmem:[#allocation9] sm:$0xff] %v787_v49  ;;  %v788_v51 = vadd.f32 %v816_v45, %v784_v50 }
 0x22e   :  { %797 = vst [vmem:[#allocation9 + $0x8] sm:$0xff] %v788_v51 }
 0x22f   :  { %1109 = shalt.err (!%p1106_p0)
}
 0x230   :  { %s1110_s14 = scalar_lea.hbm %s1244_s5, 256 }
 0x231   :  { %p1111_p1 = scmp.ne.s32.totalorder %s1244_s5, %s1110_s14  ;;  %p1114_p2 = scmp.lt.u32.totalorder %s1110_s14, %s1244_s5 }
 0x233   :  { %p1116_p3 = pnand %p1114_p2, %p1111_p1 }
 0x235   :  { %1119 = shalt.err (!%p1116_p3)
}
 0x236   :  { %809 = dma.vmem_to_hbm [thread:$0]  %s804_s11, 256, %s1244_s5, [#allocation5], %s1130_s1, %s1130_s1, %s1131_s17  }
 0x237   :  { %1124 = dma.done.wait [#allocation5], 256  }
 0x238   :  { %1125 = vsyncadd [#allocation5], 4294967040 }
 0x239   :  { %813 = vsyncpa [#allocation4], 1 }
 0x23a   :  { %814 = vsyncpa [#allocation7], 1 }
 0x23b   :  { %815 = vsyncpa [#allocation5], 1 }

</bundles_post_ra>
